<compile_context>
chip_gen: v6e
topology: v6e:2x2x1
jax: 0.10.0
libtpu: 0.0.40
codegen_flags: <defaults>
</compile_context>

<pallas_src>
import functools

import jax
import jax.numpy as jnp
from jax.experimental import pallas as pl
from jax.experimental.pallas import tpu as pltpu


def _se_kernel(x_ref, w1_ref, w2t_ref, o_ref, *, inv_hw, scale_dtype):
    # x_ref, o_ref: (BT, C, HW)
    # w1_ref:       (Cr, C)   fc1 weight, PyTorch (out, in) layout
    # w2t_ref:      (Cr, C)   fc2 weight transposed (lane-dense along C)

    # Squeeze: read #1 of the x tile.  Sum over the spatial (lane) axis in f32
    # and scale by 1/(H*W).  Mosaic masks any lane padding, so the logical sum
    # is exact for arbitrary HW.
    pooled = jnp.sum(x_ref[...].astype(jnp.float32), axis=-1) * inv_hw   # (BT, C)

    # Excitation: batched across BT; f32 accumulation on the MXU.
    h = jax.lax.dot_general(
        pooled, w1_ref[...].astype(jnp.float32),
        dimension_numbers=(((1,), (1,)), ((), ())),        # pooled @ w1.T
        preferred_element_type=jnp.float32)                # (BT, Cr)
    h = jnp.maximum(h, 0.0)
    s = jnp.dot(h, w2t_ref[...].astype(jnp.float32),       # h @ w2.T
                preferred_element_type=jnp.float32)        # (BT, C)
    s = jax.nn.sigmoid(s)

    # Scale: read #2 of the x tile (fresh VMEM loads keep vreg pressure low),
    # broadcast the per-channel gate across the spatial lanes.  scale_dtype is
    # the input dtype on chips with native low-precision VPU, f32 otherwise.
    gate = s.astype(scale_dtype)
    o_ref[...] = (x_ref[...].astype(scale_dtype) * gate[:, :, None]).astype(o_ref.dtype)


def _chip_info():
    """(x-tile target bytes, physical VMEM bytes, two TensorCores?, bf16 VPU?)."""
    kind = ""
    try:
        kind = jax.devices()[0].device_kind.lower()
    except Exception:
        pass
    if "v5" in kind:
        return 4 << 20, 128 << 20, False, False
    if "v6" in kind:
        return 12 << 20, 128 << 20, False, True
    # v7x or unknown: assume 2 TensorCores and the smaller 64 MiB VMEM.
    return 8 << 20, 64 << 20, True, True


def _choose_bt(B, per_elem_bytes, target_bytes, two_cores):
    """Batch elements per grid step.

    Pack as many elements as fit the tile target, keep >= 2 grid steps when
    possible, and on dual-TC chips prefer an even grid length (without
    shrinking the tile below half the target) so both cores get equal work.
    No divisibility requirement: the grid uses pl.cdiv with a partial last
    block handled by Mosaic masking.
    """
    cap = max(1, min(B, target_bytes // max(1, per_elem_bytes)))
    if B > 1:
        cap = min(cap, pl.cdiv(B, 2))        # at least two grid steps
    bt = cap
    if two_cores and B > 1:
        lo = max(1, cap // 2)
        for cand in range(cap, lo - 1, -1):
            if pl.cdiv(B, cand) % 2 == 0:
                bt = cand
                break
    return bt


def se_layer(x, w1, w2):
    """x: (B, C, H, W); w1: (C//r, C); w2: (C, C//r) (PyTorch Linear layout)."""
    B, C, H, W = x.shape
    HW = H * W
    Cr = w1.shape[0]
    itemsize = jnp.dtype(x.dtype).itemsize

    target_bytes, vmem_phys, two_cores, bf16_vpu = _chip_info()

    # Physical VMEM footprint of one batch element's (C, HW) slab: Mosaic pads
    # C to the sublane pack and HW to 128 lanes internally (no host-side pad).
    sub = (8 * 4) // itemsize                     # 8 for f32, 16 for bf16
    c_phys = -(-C // sub) * sub
    hw_phys = -(-HW // 128) * 128
    per_elem_bytes = c_phys * hw_phys * itemsize

    BT = _choose_bt(B, per_elem_bytes, target_bytes, two_cores)
    grid = (pl.cdiv(B, BT),)

    x_flat = x.reshape(B, C, HW)                  # metadata-only reshape, no HBM copy
    w2t = w2.T                                    # (Cr, C), lane-dense along C

    # VMEM budget: double-buffered input + output tiles + (double-buffered)
    # weights + slack; capped just under physical VMEM for this generation.
    w_phys = 2 * 2 * (-(-Cr // sub) * sub) * (-(-C // 128) * 128) * jnp.dtype(w1.dtype).itemsize
    vmem_needed = 2 * 2 * BT * per_elem_bytes + w_phys + (2 << 20)
    # TODO(synk): add an HW-split two-pass fallback (pass 1 accumulates partial
    # channel sums, pass 2 applies the gate) for shapes where even one batch
    # element's slab exceeds VMEM; today such shapes fail with an explicit
    # VMEM-limit compile error instead of silently mis-sizing.
    vmem_limit = int(min(max(vmem_needed, 32 << 20), vmem_phys - (2 << 20)))

    # Final full-tile multiply in the input dtype only on chips with a native
    # low-precision VPU (v6e/v7x); v5e and f32 inputs stay in f32.
    scale_dtype = x.dtype if (x.dtype != jnp.float32 and bf16_vpu) else jnp.float32

    kernel = functools.partial(_se_kernel, inv_hw=1.0 / HW, scale_dtype=scale_dtype)

    out = pl.pallas_call(
        kernel,
        out_shape=jax.ShapeDtypeStruct((B, C, HW), x.dtype),
        grid_spec=pltpu.PrefetchScalarGridSpec(
            num_scalar_prefetch=0,
            grid=grid,
            in_specs=[
                # Trailing dims equal the full array extents -> (8,128) rule is
                # satisfied for any C/HW; Mosaic pads/masks inside VMEM.
                pl.BlockSpec((BT, C, HW), lambda b: (b, 0, 0)),
                pl.BlockSpec((Cr, C), lambda b: (0, 0)),
                pl.BlockSpec((Cr, C), lambda b: (0, 0)),
            ],
            out_specs=pl.BlockSpec((BT, C, HW), lambda b: (b, 0, 0)),
        ),
        compiler_params=pltpu.CompilerParams(
            dimension_semantics=("parallel",),
            vmem_limit_bytes=vmem_limit),
    )(x_flat, w1, w2t)

    return out.reshape(B, C, H, W)


def se_layer_ref(x, w1, w2):
    """Pure-JAX reference matching the PyTorch forward."""
    y = jnp.mean(x, axis=(2, 3))                      # (B, C)
    y = jnp.maximum(y @ w1.T, 0.0)                    # (B, C//r)
    y = jax.nn.sigmoid(y @ w2.T)                      # (B, C)
    return x * y[:, :, None, None]


if __name__ == "__main__":
    # Shapes consistent with SELayer(channel=64, reduction=16): hidden = 4.
    B, C, H, W = 2, 64, 16, 16
    reduction = 16
    Cr = C // reduction

    key = jax.random.PRNGKey(0)
    kx, k1, k2 = jax.random.split(key, 3)
    x = jax.random.normal(kx, (B, C, H, W), dtype=jnp.float32)
    # PyTorch Linear weight layout: (out_features, in_features).
    w1 = jax.random.normal(k1, (Cr, C), dtype=jnp.float32) * 0.1
    w2 = jax.random.normal(k2, (C, Cr), dtype=jnp.float32) * 0.1

    out = jax.block_until_ready(se_layer(x, w1, w2))
    ref = se_layer_ref(x, w1, w2)
    assert out.shape == (B, C, H, W)
    assert jnp.allclose(out, ref, atol=1e-5, rtol=1e-5), "mismatch vs reference"
    print("KERNEL_OK")
</pallas_src>

<mosaic_0001>
module attributes {stable_mosaic.version = 11 : i64} {
  func.func @_se_kernel(%arg0: i32, %arg1: memref<1x64x256xf32, #tpu.memory_space<vmem>>, %arg2: memref<4x64xf32, #tpu.memory_space<vmem>>, %arg3: memref<4x64xf32, #tpu.memory_space<vmem>>, %arg4: memref<1x64x256xf32, #tpu.memory_space<vmem>>) attributes {dimension_semantics = [#tpu.dimension_semantics<parallel>], iteration_bounds = array<i64: 2>, scalar_prefetch = 0 : i64, scratch_operands = 0 : i64, tpu.core_type = #tpu.core_type<tc>, window_params = [{transform_indices = @transform_0, window_bounds = array<i64: 1, 64, 256>}, {pipeline_mode = #tpu.pipeline_mode<synchronous>, transform_indices = @transform_1, window_bounds = array<i64: 4, 64>}, {pipeline_mode = #tpu.pipeline_mode<synchronous>, transform_indices = @transform_2, window_bounds = array<i64: 4, 64>}, {transform_indices = @transform_3, window_bounds = array<i64: 1, 64, 256>}]} {
    %c0 = arith.constant 0 : index
    %c0_0 = arith.constant 0 : index
    %c0_1 = arith.constant 0 : index
    %0 = vector.load %arg1[%c0, %c0_0, %c0_1] : memref<1x64x256xf32, #tpu.memory_space<vmem>>, vector<1x64x256xf32>
    %cst = arith.constant dense<0.000000e+00> : vector<1x64xf32>
    %1 = vector.multi_reduction <add>, %0, %cst [2] : vector<1x64x256xf32> to vector<1x64xf32>
    %cst_2 = arith.constant 3.906250e-03 : f32
    %2 = vector.broadcast %cst_2 : f32 to vector<1x64xf32>
    %3 = arith.mulf %1, %2 : vector<1x64xf32>
    %c0_3 = arith.constant 0 : index
    %c0_4 = arith.constant 0 : index
    %4 = vector.load %arg2[%c0_3, %c0_4] : memref<4x64xf32, #tpu.memory_space<vmem>>, vector<4x64xf32>
    %cst_5 = arith.constant dense<0.000000e+00> : vector<1x4xf32>
    %5 = tpu.matmul %3, %4, %cst_5 {dimension_numbers = #tpu.dot_dimension_numbers<[1], [1], [0], [0], [0, 0, 1, 0], [], []>} : vector<1x64xf32>, vector<4x64xf32>, vector<1x4xf32> -> vector<1x4xf32>
    %cst_6 = arith.constant 0.000000e+00 : f32
    %6 = vector.broadcast %cst_6 : f32 to vector<1x4xf32>
    %7 = arith.maximumf %5, %6 : vector<1x4xf32>
    %c0_7 = arith.constant 0 : index
    %c0_8 = arith.constant 0 : index
    %8 = vector.load %arg3[%c0_7, %c0_8] : memref<4x64xf32, #tpu.memory_space<vmem>>, vector<4x64xf32>
    %cst_9 = arith.constant dense<0.000000e+00> : vector<1x64xf32>
    %9 = tpu.matmul %7, %8, %cst_9 {dimension_numbers = #tpu.dot_dimension_numbers<[1], [0], [0], [1], [0, 0, 1, 1], [], []>} : vector<1x4xf32>, vector<4x64xf32>, vector<1x64xf32> -> vector<1x64xf32>
    %10 = arith.negf %9 : vector<1x64xf32>
    %11 = math.exp %10 : vector<1x64xf32>
    %cst_10 = arith.constant 1.000000e+00 : f32
    %12 = vector.broadcast %cst_10 : f32 to vector<1x64xf32>
    %13 = arith.addf %12, %11 : vector<1x64xf32>
    %14 = arith.divf %12, %13 : vector<1x64xf32>
    %c0_11 = arith.constant 0 : index
    %c0_12 = arith.constant 0 : index
    %c0_13 = arith.constant 0 : index
    %15 = vector.load %arg1[%c0_11, %c0_12, %c0_13] : memref<1x64x256xf32, #tpu.memory_space<vmem>>, vector<1x64x256xf32>
    %16 = vector.shape_cast %14 : vector<1x64xf32> to vector<1x64x1xf32>
    %17 = vector.broadcast %16 : vector<1x64x1xf32> to vector<1x64x256xf32>
    %18 = arith.mulf %15, %17 : vector<1x64x256xf32>
    %c0_14 = arith.constant 0 : index
    %c0_15 = arith.constant 0 : index
    %c0_16 = arith.constant 0 : index
    %19 = vector.load %arg4[%c0_14, %c0_15, %c0_16] : memref<1x64x256xf32, #tpu.memory_space<vmem>>, vector<1x64x256xf32>
    tpu.vector_store %arg4[%c0_14, %c0_15, %c0_16], %18 {strides = array<i32>} : memref<1x64x256xf32, #tpu.memory_space<vmem>>, vector<1x64x256xf32>,
    return
  }
  func.func @transform_0(%arg0: i32) -> (i32, i32, i32) {
    %c0_i32 = arith.constant 0 : i32
    %c0_i32_0 = arith.constant 0 : i32
    %c0_i32_1 = arith.constant 0 : i32
    return %arg0, %c0_i32, %c0_i32_0 : i32, i32, i32
  }
  func.func @transform_1(%arg0: i32) -> (i32, i32) {
    %c0_i32 = arith.constant 0 : i32
    %c0_i32_0 = arith.constant 0 : i32
    %c0_i32_1 = arith.constant 0 : i32
    return %c0_i32, %c0_i32_0 : i32, i32
  }
  func.func @transform_2(%arg0: i32) -> (i32, i32) {
    %c0_i32 = arith.constant 0 : i32
    %c0_i32_0 = arith.constant 0 : i32
    %c0_i32_1 = arith.constant 0 : i32
    return %c0_i32, %c0_i32_0 : i32, i32
  }
  func.func @transform_3(%arg0: i32) -> (i32, i32, i32) {
    %c0_i32 = arith.constant 0 : i32
    %c0_i32_0 = arith.constant 0 : i32
    %c0_i32_1 = arith.constant 0 : i32
    return %arg0, %c0_i32, %c0_i32_0 : i32, i32, i32
  }
}

</mosaic_0001>

<bundles_post_ra>
// kernel: tpu_custom_call.1
= control target key start
LH: loop header
LB: loop body
LE: loop exit
PB: predicated region body
PF: predicated region fallthrough
CT: control target
= control target key end

     0   :  { %8 = vsyncpa [#allocation3], 0  ;;  %s1250_s0 = inlined_call_operand.hbm [shape: f32[2,64,256], index: 0, kind: input, shape index: {}]   ;;  %s1251_s1 = inlined_call_operand.hbm [shape: f32[4,64], index: 1, kind: input, shape index: {}]   ;;  %s1252_s2 = inlined_call_operand.hbm [shape: f32[4,64], index: 2, kind: input, shape index: {}]   ;;  %s1253_s3 = inlined_call_operand.hbm [shape: f32[2,64,256], index: 3, kind: output, shape index: {}]  }
   0x1   :  { %10 = vsyncpa [#allocation3 + $0x1], 0 }
   0x2   :  { %11 = vsyncpa [#allocation6], 0 }
   0x3   :  { %12 = vsyncpa [#allocation4], 0 }
   0x4   :  { %14 = vsyncpa [#allocation4 + $0x1], 0  ;;  %s957_s12 = smov 0   ;;  %s959_s13 = smov 0  }
   0x5   :  { %s961_s14 = smov 0   ;;  %s963_s15 = smov 0  }
   0x6 LB: > { %s978_s16 = sadd.s32 4294967295, %s925_s15   ;;  %s661_s17 = sadd.s32 4294967294, %s925_s15   ;;  %s925_s15 = sphi %s963_s15, %s1276_s15   ;;  %s921_s14 = sphi %s961_s14, %s1275_s14   ;;  %s917_s13 = sphi %s959_s13, %s1274_s13   ;;  %s913_s12 = sphi %s957_s12, %s1273_s12  }
   0x7   : > { %s982_s18 = sadd.s32 1, %s925_s15   ;;  %s27_s19 = sadd.s32 1, %s921_s14 }
   0x8   : > { %s24_s20 = ssub.s32 %s925_s15, %s982_s18  ;;  %p34_p0 = scmp.ne.s32.totalorder %s921_s14, %s917_s13 }
   0x9   : > { %p25_p1 = scmp.eq.s32.totalorder %s24_s20, 0  ;;  %p35_p2 = scmp.eq.s32.totalorder %s925_s15, 0 }
   0xa   : > { %p40_p3 = scmp.ne.s32.totalorder %s917_s13, %s913_s12  ;;  %p1254_p4 = scmp.eq.s32.totalorder %s978_s16, 0 }
   0xb   : > { %s994_s21 = scalar_select %p25_p1, %s921_s14, %s27_s19  }
   0xc   : > { %p996_p5 = por %p35_p2, %p34_p0  ;;  %p1002_p6 = por %p1254_p4, %p40_p3 }
   0xd   : > { %p106_p7 = scmp.eq.s32.totalorder %s978_s16, 1  ;;  %p112_p8 = scmp.eq.s32.totalorder %s661_s17, 1 }
   0xe   : > { %s1259_s23 = scalar_select %p1002_p6, 1, 0 }
   0xf   : > { %p662_p9 = scmp.ge.s32.totalorder %s925_s15, 1  ;;  %p119_p10 = scmp.lt.s32.totalorder %s925_s15, 3 }
  0x10   : > { %p1009_p11 = por %p106_p7, %p34_p0  ;;  %p1013_p12 = por %p112_p8, %p40_p3 }
  0x11   : > { %p1017_p13 = pnand %p662_p9, %p119_p10  ;;  %s927_s27 = smov [#allocation5]  }
  0x12   : > { %s1260_s24 = scalar_select %p1009_p11, 1, 0 }
  0x13   : > { %s1261_s25 = scalar_select %p1013_p12, 1, 0 }
  0x14   : > { %s1262_s26 = scalar_select %p1017_p13, 1, 0 }
  0x15   : > { %p712_p2 = pneg %p1017_p13  ;;  %s132_s28 = sshll.u32 %s927_s27, 4  ;;  %s133_s28 = int_to_ptr.vmem [resolvable:$true] %s132_s28 }
  0x16   : > { %p729_p4 = scmp.lt.s32.totalorder %s925_s15, 2  ;;  %p1263_p0 = scmp.eq.s32.totalorder %s978_s16, 0 }
  0x17   : > { %s928_s4 = smov [#allocation7]   ;;  %s788_s6 = scalar_lea.vmem %s133_s28, 64 }
  0x18   : > { %p1027_p7 = pnand %p712_p2, %p1263_p0  ;;  %p1033_p3 = pnand %p729_p4, %p996_p5 }
  0x19   : > { %s143_s5 = sshll.u32 %s928_s4, 4  ;;  %p789_p9 = scmp.ne.s32.totalorder %s133_s28, %s788_s6  ;;  %s144_s5 = int_to_ptr.vmem [resolvable:$true] %s143_s5 }
  0x1a   : > { %p779_p8 = pneg %p1027_p7  ;;  %p796_p0 = scmp.lt.s32.totalorder %s133_s28, %s133_s28 }
  0x1b   : > { %p797_p1 = scmp.lt.s32.totalorder %s788_s6, %s788_s6 }
  0x1c   : > { %p791_p10 = pnand %p789_p9, %p779_p8 }
  0x1d   : > { %p798_p12 = por %p797_p1, %p796_p0 }
  0x1e   : > { %p792_p2 = pneg %p791_p10 }
  0x20   : > { %p799_p11 = pnand %p798_p12, %p792_p2 }
  0x22   : > { %802 = shalt.err (!%p799_p11)
}
  0x23   : > { %715 = dma.hbm_to_vmem [thread:$0]  (!%p1027_p7), %s1251_s1, 64, %s133_s28, [#allocation6]  }
  0x24   : > { %s154_s9 = sand.u32 1, %s921_s14   ;;  %s814_s10 = scalar_lea.vmem %s144_s5, 64 }
  0x25   : > { %p815_p4 = scmp.ne.s32.totalorder %s144_s5, %s814_s10  ;;  %p822_p10 = scmp.lt.s32.totalorder %s144_s5, %s144_s5 }
  0x26   : > { %p823_p6 = scmp.lt.s32.totalorder %s814_s10, %s814_s10 }
  0x27   : > { %p817_p5 = pnand %p815_p4, %p779_p8 }
  0x28   : > { %p824_p1 = por %p823_p6, %p822_p10 }
  0x29   : > { %p818_p9 = pneg %p817_p5 }
  0x2b   : > { %p825_p12 = pnand %p824_p1, %p818_p9 }
  0x2d   : > { %828 = shalt.err (!%p825_p12)
}
  0x2e   : > { %718 = dma.hbm_to_vmem [thread:$0]  (!%p1027_p7), %s1252_s2, 64, %s144_s5, [#allocation6]  }
  0x2f   : > { %s666_s19 = sshll.u32 %s154_s9, 7  ;;  %s684_s20 = sshll.u32 %s925_s15, 11 }
  0x30   : > { %s1060_s28 = scalar_lea.hbm %s1250_s0, %s684_s20  ;;  %s158_s4 = scalar_lea.vmem [#allocation2], %s666_s19 }
  0x31   : > { %s165_s6 = sshll.u32 %s158_s4, 4  ;;  %s1064_s29 = scalar_lea.sflag [#allocation3], %s154_s9  ;;  %s1062_s6 = int_to_ptr.vmem [resolvable:$true] %s165_s6 }
  0x32   : > { %s829_s7 = scalar_lea.hbm %s1060_s28, 2048  ;;  %p831_p11 = pneg %p1033_p3 }
  0x33   : > { %p830_p6 = scmp.ne.s32.totalorder %s1060_s28, %s829_s7  ;;  %s834_s10 = scalar_lea.hbm %s1250_s0, 4096 }
  0x34   : > { %p835_p2 = scmp.lt.s32.totalorder %s1060_s28, %s1250_s0  ;;  %p836_p0 = scmp.lt.s32.totalorder %s834_s10, %s829_s7 }
  0x35   : > { %p832_p7 = pnand %p831_p11, %p830_p6 }
  0x36   : > { %p837_p4 = por %p836_p0, %p835_p2 }
  0x37   : > { %p833_p8 = pneg %p832_p7 }
  0x39   : > { %p838_p5 = pnand %p837_p4, %p833_p8 }
  0x3b   : > { %841 = shalt.err (!%p838_p5)
}
  0x3c   : > { %s842_s9 = scalar_lea.vmem %s1062_s6, 2048  ;;  %s929_s19 = smov [#allocation2]  }
  0x3d   : > { %p843_p9 = scmp.ne.s32.totalorder %s1062_s6, %s842_s9  ;;  %s847_s20 = sshll.u32 %s929_s19, 4  ;;  %s848_s20 = int_to_ptr.vmem [resolvable:$false] %s847_s20 }
  0x3e   : > { %s849_s22 = scalar_lea.vmem %s848_s20, 4096  ;;  %p850_p12 = scmp.lt.s32.totalorder %s1062_s6, %s848_s20 }
  0x3f   : > { %p845_p10 = pnand %p843_p9, %p831_p11  ;;  %p851_p6 = scmp.lt.s32.totalorder %s849_s22, %s842_s9 }
  0x41   : > { %p846_p1 = pneg %p845_p10  ;;  %p852_p7 = por %p851_p6, %p850_p12 }
  0x43   : > { %p853_p13 = pnand %p852_p7, %p846_p1 }
  0x45   : > { %856 = shalt.err (!%p853_p13)
}
  0x46   : > { %s930_s27 = smov 256   ;;  %s931_s4 = smov 16  }
  0x47   : > { %722 = dma.hbm_to_vmem [thread:$0]  (!%p1033_p3), %s1060_s28, 2048, %s1062_s6, %s1064_s29, %s930_s27, %s930_s27, %s931_s4  }
  0x48   : > { %p1266_p11 = scmp.ne.s32.totalorder %s1262_s26, 0 }
  0x49   : > { %s1088_s7 = sand.u32 (!%p1266_p11), 1, %s917_s13   ;;  %p1267_p13 = scmp.ne.s32.totalorder (!%p1266_p11), %s1259_s23, 0 }
  0x4a   : > { %177 = sbr.rel (%p1266_p11) target bundleno = 811 (0x32b), region = 32  ;;  %s670_s5 = sshll.u32 (!%p1266_p11), %s1088_s7, 7 }
  0x4b   : > { %s180_s8 = scalar_lea.sflag (!%p1266_p11), [#allocation3], %s1088_s7  ;;  %s183_s10 = scalar_lea.vmem (!%p1266_p11), [#allocation2], %s670_s5 }
  0x4f   : > { %900 = dma.done.wait (%p1267_p13), %s180_s8, 2048  }
  0x50   : > { %902 = vsyncadd (%p1267_p13), %s180_s8, 4294965248  ;;  %p1268_p3 = scmp.eq.s32.totalorder %s978_s16, 0 }
  0x52   : > { %904 = dma.done.wait (%p1268_p3), [#allocation6], 128   ;;  %p1269_p8 = pmov %p1268_p3 }
  0x53   : > { %v1102_v0 = vld [vmem:[%s183_s10] sm:$0xff]  ;;  %v1104_v1 = vld [vmem:[%s183_s10 + $0x8] sm:$0xff]  ;;  %v1112_v5 = vld [vmem:[%s183_s10 + $0x10] sm:$0xff]  ;;  %v932_v24 = vmov 0.0   ;;  %vm326_vm0 = vcmask 523264   ;;  %vm933_vm1 = vmmov 0   ;;  %v271_v26 = vlaneseq }
  0x54   : > { %906 = vsyncadd (%p1269_p8), [#allocation6], 4294967168  ;;  %v1106_v2 = vld [vmem:[%s183_s10 + $0x20] sm:$0xff]  ;;  %v230_v3 = vadd.f32 %v1104_v1, %v1102_v0  ;;  %v1110_v4 = vld [vmem:[%s183_s10 + $0x28] sm:$0xff]  ;;  %690 = vmatprep.subr.mxu0 %v932_v24  ;;  %695 = vmatprep.subr.mxu1 %v932_v24  ;;  %vm282_vm2 = vcmask 130112   ;;  %vm289_vm3 = vcmask 195712  }
  0x55   : > { %v1114_v6 = vld [vmem:[%s183_s10 + $0x18] sm:$0xff]  ;;  %v236_v7 = vadd.f32 %v1110_v4, %v1106_v2  ;;  %v1118_v8 = vld [vmem:[%s183_s10 + $0x30] sm:$0xff]  ;;  %v1126_v12 = vld [vmem:[%s183_s10 + $0x40] sm:$0xff]  ;;  %692 = vmatprep.mubr.msk.f32.mxu0 %vm933_vm1, %v932_v24  ;;  %697 = vmatprep.mubr.msk.f32.mxu1 %vm933_vm1, %v932_v24  ;;  %v272_v27 = vand.u32 127, %v271_v26  ;;  %v1151_v28 = vshrl.u32 %v271_v26, 7  ;;  %vm296_vm4 = vcmask 261312  }
  0x56   : > { %v1120_v9 = vld [vmem:[%s183_s10 + $0x38] sm:$0xff]  ;;  %231 = vadd.xlane.f32.xlu0 %v230_v3  ;;  %v233_v10 = vadd.f32 %v1114_v6, %v1112_v5  ;;  %v1128_v13 = vld [vmem:[%s183_s10 + $0x48] sm:$0xff]  ;;  %v1130_v14 = vld [vmem:[%s183_s10 + $0x50] sm:$0xff]  ;;  %vm303_vm5 = vcmask 326912   ;;  %vm310_vm6 = vcmask 392512   ;;  %vm317_vm7 = vcmask 458112  }
  0x57   : > { %237 = vadd.xlane.f32.xlu1 %v236_v7  ;;  %v239_v11 = vadd.f32 %v1120_v9, %v1118_v8  ;;  %v1132_v15 = vld [vmem:[%s183_s10 + $0x58] sm:$0xff]  ;;  %v242_v16 = vadd.f32 %v1128_v13, %v1126_v12  ;;  %v1138_v18 = vld [vmem:[%s183_s10 + $0x60] sm:$0xff]  ;;  %v1140_v19 = vld [vmem:[%s183_s10 + $0x68] sm:$0xff]  ;;  %v277_v29 = vadd.s32 4294967288, %v272_v27  ;;  %v284_v31 = vadd.s32 4294967280, %v272_v27  ;;  %s1170_s23 = scalar_lea.vmem [#allocation8], %s670_s5 }
  0x58   : > { %v245_v17 = vadd.f32 %v1132_v15, %v1130_v14  ;;  %v1142_v20 = vld [vmem:[%s183_s10 + $0x70] sm:$0xff]  ;;  %v1144_v21 = vld [vmem:[%s183_s10 + $0x78] sm:$0xff]  ;;  %v248_v22 = vadd.f32 %v1140_v19, %v1138_v18  ;;  %v262_v25 = vld [vmem:[#allocation5] sm:$0xf]  ;;  %v291_v32 = vadd.s32 4294967272, %v272_v27  ;;  %v275_v34 = vsub.s32 %v272_v27, %v1151_v28  ;;  %s685_s26 = sshll.u32 %s978_s16, 11 }
  0x59   : > { %v251_v23 = vadd.f32 %v1144_v21, %v1142_v20  ;;  %691 = vmatpush3.xpose.msk.msra.mxu0 %vm326_vm0, %v262_v25  ;;  %v280_v36 = vsub.s32 %v277_v29, %v1151_v28  ;;  %v298_v37 = vadd.s32 4294967264, %v272_v27  ;;  %v287_v38 = vsub.s32 %v284_v31, %v1151_v28  ;;  %s569_s30 = sshll.u32 %s1170_s23, 4  ;;  %s1201_s29 = scalar_lea.hbm %s1253_s3, %s685_s26  ;;  %s1203_s30 = int_to_ptr.vmem [resolvable:$true] %s569_s30 }
  0x5a   : > { %234 = vadd.xlane.f32.xlu0 %v233_v10  ;;  %v294_v41 = vsub.s32 %v291_v32, %v1151_v28  ;;  %v305_v42 = vadd.s32 4294967256, %v272_v27  ;;  %v312_v49 = vadd.s32 4294967248, %v272_v27  ;;  %v319_v54 = vadd.s32 4294967240, %v272_v27  ;;  %v403_v27 = vld [vmem:[#allocation7] sm:$0xf]  ;;  %s556_s16 = scalar_lea.sflag [#allocation4], %s1088_s7 }
  0x5b   : > { %240 = vadd.xlane.f32.xlu1 %v239_v11  ;;  %v301_v48 = vsub.s32 %v298_v37, %v1151_v28  ;;  %vm324_vm8 = vcmask 523712   ;;  %vm408_vm9 = vcmask 1043456   ;;  %vm404_vm10 = vcmask 31744   ;;  %s857_s11 = scalar_lea.vmem %s1203_s30, 2048  ;;  %p1270_p0 = scmp.ne.s32.totalorder %s1260_s24, 0 }
  0x5c   : > { %v308_v53 = vsub.s32 %v305_v42, %v1151_v28  ;;  %v315_v62 = vsub.s32 %v312_v49, %v1151_v28  ;;  %v322_v7 = vsub.s32 %v319_v54, %v1151_v28  ;;  %696 = vmatpush3.msk.msra.mxu1 %vm408_vm9, %v403_v27  ;;  %v490_v37 = vsub.s32 0, %v1151_v28  ;;  %p858_p2 = scmp.ne.s32.totalorder %s1203_s30, %s857_s11  ;;  %s934_s17 = smov [#allocation8]  }
  0x5d   : > { %s861_s9 = sshll.u32 %s934_s17, 4  ;;  %s862_s9 = int_to_ptr.vmem [resolvable:$false] %s861_s9 }
  0x5e   : > { %243 = vadd.xlane.f32.xlu0 %v242_v16  ;;  %p859_p4 = pnand %p858_p2, %p1270_p0  ;;  %s863_s19 = scalar_lea.vmem %s862_s9, 4096 }
  0x5f   : > { %246 = vadd.xlane.f32.xlu1 %v245_v17  ;;  %p864_p9 = scmp.lt.s32.totalorder %s1203_s30, %s862_s9  ;;  %p865_p10 = scmp.lt.s32.totalorder %s863_s19, %s857_s11 }
  0x60   : > { %p860_p5 = pneg %p859_p4 }
  0x61   : > { %p866_p1 = por %p865_p10, %p864_p9 }
  0x62   : > { %249 = vadd.xlane.f32.xlu0 %v248_v22 }
  0x63   : > { %252 = vadd.xlane.f32.xlu1 %v251_v23  ;;  %p867_p12 = pnand %p866_p1, %p860_p5 }
  0xdf   : > { %v232_v30 = vpop.xlane.xlu0 %231 }
  0xe0   : > { %v238_v33 = vpop.xlane.xlu1 %237  ;;  %v254_v35 = vmul.f32 0.00390625, %v232_v30 }
  0xe1   : > { %v256_v39 = vmul.f32 0.00390625, %v238_v33 }
  0xe2   : > { %v276_v46 = vrot.slane %v254_v35, %v275_v34 }
  0xe3   : > { %v235_v40 = vpop.xlane.xlu0 %234  ;;  %v288_v50 = vrot.slane %v256_v39, %v287_v38 }
  0xe4   : > { %v255_v43 = vmul.f32 0.00390625, %v235_v40  ;;  %v241_v44 = vpop.xlane.xlu1 %240 }
  0xe5   : > { %v257_v45 = vmul.f32 0.00390625, %v241_v44 }
  0xe6   : > { %v281_v47 = vrot.slane %v255_v43, %v280_v36 }
  0xe7   : > { %v295_v51 = vrot.slane %v257_v45, %v294_v41  ;;  %v244_v52 = vpop.xlane.xlu0 %243 }
  0xe8   : > { %v283_v55 = vsel %vm282_vm2, %v281_v47, %v276_v46  ;;  %v258_v56 = vmul.f32 0.00390625, %v244_v52  ;;  %v247_v57 = vpop.xlane.xlu1 %246 }
  0xe9   : > { %v290_v58 = vsel %vm289_vm3, %v288_v50, %v283_v55  ;;  %v259_v59 = vmul.f32 0.00390625, %v247_v57 }
  0xea   : > { %v297_v60 = vsel %vm296_vm4, %v295_v51, %v290_v58  ;;  %v302_v61 = vrot.slane %v258_v56, %v301_v48 }
  0xeb   : > { %v309_v63 = vrot.slane %v259_v59, %v308_v53  ;;  %v250_v3 = vpop.xlane.xlu0 %249 }
  0xec   : > { %v304_v10 = vsel %vm303_vm5, %v302_v61, %v297_v60  ;;  %v260_v11 = vmul.f32 0.00390625, %v250_v3  ;;  %v253_v16 = vpop.xlane.xlu1 %252 }
  0xed   : > { %v261_v17 = vmul.f32 0.00390625, %v253_v16  ;;  %v311_v23 = vsel %vm310_vm6, %v309_v63, %v304_v10 }
  0xee   : > { %v316_v22 = vrot.slane %v260_v11, %v315_v62 }
  0xef   : > { %v323_v24 = vrot.slane %v261_v17, %v322_v7 }
  0xf0   : > { %v318_v25 = vsel %vm317_vm7, %v316_v22, %v311_v23 }
  0xf1   : > { %v325_v26 = vsel %vm324_vm8, %v323_v24, %v318_v25 }
  0xf2   : > { %693 = vmatmul.mubr.msk.f32.vlgmr.msra.gmra.mxu0 %vm326_vm0, %v325_v26 }
 0x1b2   : > { %v398_v29 = vpop.f32.mrf.mxu0 }
 0x1b3   : > { %v402_v30 = vmax.f32 %v398_v29, 0.0 }
 0x1b4   : > { %v694_v31 = vpop.f32.mrf.mxu0 }
 0x1b5   : > { %698 = vmatmul.mubr.msk.f32.vlgmr.msra.gmra.mxu1 %vm404_vm10, %v402_v30 }
 0x275   : > { %v478_v32 = vpop.f32.mrf.mxu1 }
 0x276   : > { %v678_v33 = vmul.f32 -1.442695, %v478_v32 }
 0x277   : > { %v699_v34 = vpop.f32.mrf.mxu1 }
 0x278   : > { %773 = vpow2.f32 %v678_v33 }
 0x285   : > { %v774_v35 = vpop.eup %773 }
 0x286   : > { %v485_v36 = vadd.f32 1.0, %v774_v35 }
 0x288   : > { %775 = vrcp.f32 %v485_v36 }
 0x295   : > { %v776_v38 = vpop.eup %775 }
 0x296   : > { %v491_v39 = vrot.slane %v776_v38, %v490_v37 }
 0x298   : > { %497 = vbcast.lane.b32.xlu1 %v491_v39, 264  ;;  %493 = vbcast.lane.b32.xlu0 %v491_v39, 256 }
 0x29c   : > { %501 = vbcast.lane.b32.xlu1 %v491_v39, 272  ;;  %509 = vbcast.lane.b32.xlu0 %v491_v39, 288 }
 0x2a0   : > { %505 = vbcast.lane.b32.xlu1 %v491_v39, 280  ;;  %517 = vbcast.lane.b32.xlu0 %v491_v39, 304 }
 0x2a4   : > { %513 = vbcast.lane.b32.xlu1 %v491_v39, 296 }
 0x2a8   : > { %521 = vbcast.lane.b32.xlu1 %v491_v39, 312 }
 0x30a   : > { %v498_v40 = vpop.permute.xlu1 %497  ;;  %v494_v41 = vpop.permute.xlu0 %493 }
 0x30b   : > { %v525_v42 = vmul.f32 %v498_v40, %v1112_v5  ;;  %v526_v43 = vmul.f32 %v498_v40, %v1114_v6  ;;  %v523_v44 = vmul.f32 %v494_v41, %v1102_v0  ;;  %v524_v28 = vmul.f32 %v494_v41, %v1104_v1 }
 0x30d   : > { %541 = vst [vmem:[%s1170_s23 + $0x10] sm:$0xff] %v525_v42  ;;  %542 = vst [vmem:[%s1170_s23 + $0x18] sm:$0xff] %v526_v43 }
 0x30e   : > { %539 = vst [vmem:[%s1170_s23] sm:$0xff] %v523_v44  ;;  %540 = vst [vmem:[%s1170_s23 + $0x8] sm:$0xff] %v524_v28  ;;  %v502_v5 = vpop.permute.xlu1 %501  ;;  %v510_v0 = vpop.permute.xlu0 %509 }
 0x30f   : > { %v527_v1 = vmul.f32 %v502_v5, %v1106_v2  ;;  %v528_v6 = vmul.f32 %v502_v5, %v1110_v4  ;;  %v531_v45 = vmul.f32 %v510_v0, %v1126_v12  ;;  %v532_v46 = vmul.f32 %v510_v0, %v1128_v13 }
 0x311   : > { %543 = vst [vmem:[%s1170_s23 + $0x20] sm:$0xff] %v527_v1  ;;  %544 = vst [vmem:[%s1170_s23 + $0x28] sm:$0xff] %v528_v6 }
 0x312   : > { %547 = vst [vmem:[%s1170_s23 + $0x40] sm:$0xff] %v531_v45  ;;  %548 = vst [vmem:[%s1170_s23 + $0x48] sm:$0xff] %v532_v46  ;;  %v506_v47 = vpop.permute.xlu1 %505  ;;  %v518_v48 = vpop.permute.xlu0 %517 }
 0x313   : > { %v529_v2 = vmul.f32 %v506_v47, %v1118_v8  ;;  %v530_v49 = vmul.f32 %v506_v47, %v1120_v9  ;;  %v535_v4 = vmul.f32 %v518_v48, %v1138_v18  ;;  %v536_v12 = vmul.f32 %v518_v48, %v1140_v19 }
 0x315   : > { %545 = vst [vmem:[%s1170_s23 + $0x30] sm:$0xff] %v529_v2  ;;  %546 = vst [vmem:[%s1170_s23 + $0x38] sm:$0xff] %v530_v49 }
 0x316   : > { %551 = vst [vmem:[%s1170_s23 + $0x60] sm:$0xff] %v535_v4  ;;  %552 = vst [vmem:[%s1170_s23 + $0x68] sm:$0xff] %v536_v12  ;;  %v514_v13 = vpop.permute.xlu1 %513 }
 0x317   : > { %v533_v50 = vmul.f32 %v514_v13, %v1130_v14  ;;  %v534_v51 = vmul.f32 %v514_v13, %v1132_v15 }
 0x319   : > { %549 = vst [vmem:[%s1170_s23 + $0x50] sm:$0xff] %v533_v50  ;;  %550 = vst [vmem:[%s1170_s23 + $0x58] sm:$0xff] %v534_v51 }
 0x31a   : > { %v522_v8 = vpop.permute.xlu1 %521 }
 0x31b   : > { %v537_v9 = vmul.f32 %v522_v8, %v1142_v20  ;;  %v538_v14 = vmul.f32 %v522_v8, %v1144_v21 }
 0x31d   : > { %553 = vst [vmem:[%s1170_s23 + $0x70] sm:$0xff] %v537_v9  ;;  %554 = vst [vmem:[%s1170_s23 + $0x78] sm:$0xff] %v538_v14 }
 0x31e   : > { %870 = shalt.err (!%p867_p12)
}
 0x31f   : > { %s871_s20 = scalar_lea.hbm %s1201_s29, 2048  ;;  %s875_s4 = scalar_lea.hbm %s1253_s3, 4096 }
 0x320   : > { %p872_p6 = scmp.ne.s32.totalorder %s1201_s29, %s871_s20  ;;  %p876_p13 = scmp.lt.s32.totalorder %s1201_s29, %s1253_s3 }
 0x321   : > { %p877_p3 = scmp.lt.s32.totalorder %s875_s4, %s871_s20 }
 0x322   : > { %p873_p7 = pnand %p872_p6, %p1270_p0 }
 0x323   : > { %p878_p8 = por %p877_p3, %p876_p13 }
 0x324   : > { %p874_p11 = pneg %p873_p7 }
 0x326   : > { %p879_p2 = pnand %p878_p8, %p874_p11 }
 0x328   : > { %882 = shalt.err (!%p879_p2)
}
 0x329   : > { %s935_s10 = smov 256   ;;  %s936_s23 = smov 16  }
 0x32a   : > { %710 = dma.vmem_to_hbm [thread:$0]  (%p1270_p0), %s1203_s30, 2048, %s1201_s29, %s556_s16, %s935_s10, %s935_s10, %s936_s23  }
 0x32b PF: > { %s584_s26 = sand.u32 1, %s913_s12   ;;  %p1271_p4 = scmp.ne.s32.totalorder %s1261_s25, 0 }
 0x32c   : > { %p1272_p5 = scmp.ge.s32.totalorder %s925_s15, 2  ;;  %s585_s28 = scalar_lea.sflag [#allocation4], %s584_s26 }
 0x32e   : > { %p724_p9 = pnand %p1272_p5, %p1271_p4 }
 0x330   : > { %p725_p10 = pneg %p724_p9 }
 0x332   : > { %908 = dma.done.wait (%p725_p10), %s585_s28, 2048  }
 0x333   : > { %910 = vsyncadd (%p725_p10), %s585_s28, 4294965248  ;;  %p17_p1 = scmp.ge.s32.totalorder %s982_s18, 4   ;;  %s1273_s12 = smov %s917_s13 }
 0x334   : > { %s1274_s13 = smov %s921_s14  ;;  %s1275_s14 = smov %s994_s21 }
 0x335   : > { %s1276_s15 = smov %s982_s18  ;;  %19 = sbr.rel (!%p17_p1) target bundleno = 6 (0x6), region = 85 }
 0x33a   :  { %590 = vsyncpa [#allocation3], 1 }
 0x33b   :  { %592 = vsyncpa [#allocation3 + $0x1], 1 }
 0x33c   :  { %593 = vsyncpa [#allocation6], 1 }
 0x33d   :  { %594 = vsyncpa [#allocation4], 1 }
 0x33e   :  { %596 = vsyncpa [#allocation4 + $0x1], 1 }

</bundles_post_ra>
